<compile_context>
chip_gen: v7x
topology: tpu7x:2x2x1
jax: 0.10.0
libtpu: 0.0.40
codegen_flags: <defaults>
</compile_context>

<pallas_src>
import functools
from collections import namedtuple

import jax
import jax.numpy as jnp
from jax.experimental import pallas as pl
from jax.experimental.pallas import tpu as pltpu

EPS = 1e-5

Statistics = namedtuple("Statistics", ["mean", "variance", "gamma", "beta"])

_VMEM_LIMIT_BYTES = 32 * 1024 * 1024     # explicit scoped-VMEM request (safe on v5e/v6e/v7x)
_DEFAULT_BLOCK_BYTES = 4 * 1024 * 1024   # per x-block budget -> ~16-20 MiB double-buffered
_MIN_BLOCK_BYTES = 512 * 1024            # keep blocks big enough to amortize per-step overhead


def _pick_tile_v(B, V, T, itemsize, max_block_bytes):
    """Variate-axis tile (rows per block). Full T stays in-block (lane axis)."""
    row_bytes = max(1, T * itemsize)
    rows_fit = max(1, max_block_bytes // row_bytes)
    if V <= 8 or V <= rows_fit:
        return V                      # whole variate axis in one block; no padding
    tv = max(8, (min(V, rows_fit) // 8) * 8)
    # Give the DMA pipeline enough steps to overlap, but keep blocks >= ~512 KiB.
    while (B * pl.cdiv(V, tv) < 8 and tv > 8
           and (tv // 2) * row_bytes >= _MIN_BLOCK_BYTES):
        tv = max(8, ((tv // 2) // 8) * 8)
    return tv


# ----------------------------- forward kernel ------------------------------
def _revin_fwd_kernel(x_ref, gamma_ref, beta_ref, out_ref, stats_ref, *, eps, inv_t):
    x = x_ref[0].astype(jnp.float32)                       # (TV, T)
    mean = jnp.sum(x, axis=-1, keepdims=True) * inv_t      # (TV, 1)
    xc = x - mean                                          # centered (torch-exact var)
    var = jnp.sum(xc * xc, axis=-1, keepdims=True) * inv_t  # biased var (unbiased=False)
    inv_std = jax.lax.rsqrt(jnp.maximum(var, eps))         # var.clamp(min=eps).rsqrt()

    gamma = gamma_ref[...].astype(jnp.float32)             # (TV, 1)
    beta = beta_ref[...].astype(jnp.float32)                # (TV, 1)
    scale = gamma * inv_std                                 # (TV, 1)

    # One FMA per element of the big tile.
    out_ref[0] = (xc * scale + beta).astype(out_ref.dtype)

    # Packed stats output block: (1, TV, 2) -> two tiny sliced stores.
    stats_ref[0, :, 0:1] = mean.astype(stats_ref.dtype)
    stats_ref[0, :, 1:2] = var.astype(stats_ref.dtype)


# ----------------------------- reverse kernel ------------------------------
def _revin_rev_kernel(y_ref, gamma_ref, beta_ref, stats_ref, out_ref, *, eps):
    y = y_ref[0].astype(jnp.float32)                        # (TV, T)
    gamma = gamma_ref[...].astype(jnp.float32)               # (TV, 1)
    beta = beta_ref[...].astype(jnp.float32)                  # (TV, 1)
    mean = stats_ref[0, :, 0:1].astype(jnp.float32)           # (TV, 1)
    var = stats_ref[0, :, 1:2].astype(jnp.float32)            # (TV, 1)

    # torch semantics: clamped_gamma = sign(gamma) * |gamma|.clamp(min=eps)
    clamped_gamma = jnp.sign(gamma) * jnp.maximum(jnp.abs(gamma), eps)
    # Fold everything into a per-row scale/shift (divide only on the tiny vector).
    scale = jnp.sqrt(var) / clamped_gamma                     # (TV, 1)
    shift = mean - beta * scale                               # (TV, 1)

    out_ref[0] = (y * scale + shift).astype(out_ref.dtype)


# ------------------------------ wrappers ------------------------------------
def revin_forward(x, gamma, beta, eps=EPS, return_statistics=False,
                  max_block_bytes=_DEFAULT_BLOCK_BYTES):
    """x: (B, V, T); gamma/beta: (V, 1).  Returns (rescaled, reverse_fn[, stats])."""
    B, V, T = x.shape
    assert gamma.shape == (V, 1) and beta.shape == (V, 1)

    itemsize = jnp.dtype(x.dtype).itemsize
    tv = _pick_tile_v(B, V, T, itemsize, max_block_bytes)
    n_vt = pl.cdiv(V, tv)
    Vp = n_vt * tv

    if Vp != V:
        pad = Vp - V
        x_p = jnp.pad(x, ((0, 0), (0, pad), (0, 0)))
        # Pad gamma with 1 so the padded rows never divide by ~0 in reverse.
        gamma_p = jnp.pad(gamma, ((0, pad), (0, 0)), constant_values=1.0)
        beta_p = jnp.pad(beta, ((0, pad), (0, 0)))
    else:
        x_p, gamma_p, beta_p = x, gamma, beta

    compiler_params = pltpu.CompilerParams(
        dimension_semantics=("parallel", "parallel"),
        vmem_limit_bytes=_VMEM_LIMIT_BYTES,
    )

    fwd_kernel = functools.partial(_revin_fwd_kernel, eps=eps, inv_t=1.0 / T)
    out_p, stats_p = pl.pallas_call(
        fwd_kernel,
        out_shape=(
            jax.ShapeDtypeStruct((B, Vp, T), x.dtype),
            jax.ShapeDtypeStruct((B, Vp, 2), jnp.float32),   # packed [mean, var]
        ),
        grid_spec=pltpu.PrefetchScalarGridSpec(
            num_scalar_prefetch=0,
            grid=(B, n_vt),
            in_specs=[
                pl.BlockSpec((1, tv, T), lambda b, v: (b, v, 0)),
                pl.BlockSpec((tv, 1), lambda b, v: (v, 0)),
                pl.BlockSpec((tv, 1), lambda b, v: (v, 0)),
            ],
            out_specs=[
                pl.BlockSpec((1, tv, T), lambda b, v: (b, v, 0)),
                pl.BlockSpec((1, tv, 2), lambda b, v: (b, v, 0)),
            ],
        ),
        compiler_params=compiler_params,
    )(x_p, gamma_p, beta_p)

    rescaled = out_p[:, :V, :] if Vp != V else out_p
    mean = stats_p[:, :V, 0:1]       # (B, V, 1), keepdim like torch
    var = stats_p[:, :V, 1:2]        # (B, V, 1)

    def reverse_fn(scaled_output):
        y = scaled_output
        if Vp != V:
            y = jnp.pad(y, ((0, 0), (0, Vp - V), (0, 0)))
        rev_kernel = functools.partial(_revin_rev_kernel, eps=eps)
        rec_p = pl.pallas_call(
            rev_kernel,
            out_shape=jax.ShapeDtypeStruct((B, Vp, T), scaled_output.dtype),
            grid_spec=pltpu.PrefetchScalarGridSpec(
                num_scalar_prefetch=0,
                grid=(B, n_vt),
                in_specs=[
                    pl.BlockSpec((1, tv, T), lambda b, v: (b, v, 0)),
                    pl.BlockSpec((tv, 1), lambda b, v: (v, 0)),
                    pl.BlockSpec((tv, 1), lambda b, v: (v, 0)),
                    pl.BlockSpec((1, tv, 2), lambda b, v: (b, v, 0)),
                ],
                out_specs=pl.BlockSpec((1, tv, T), lambda b, v: (b, v, 0)),
            ),
            compiler_params=compiler_params,
        )(y, gamma_p, beta_p, stats_p)
        return rec_p[:, :V, :] if Vp != V else rec_p

    if not return_statistics:
        return rescaled, reverse_fn
    return rescaled, reverse_fn, Statistics(mean, var, gamma, beta)


# ------------------------------ reference -----------------------------------
def revin_forward_ref(x, gamma, beta, eps=EPS):
    x = x.astype(jnp.float32)
    mean = jnp.mean(x, axis=-1, keepdims=True)
    var = jnp.mean((x - mean) ** 2, axis=-1, keepdims=True)
    var_rsqrt = jax.lax.rsqrt(jnp.maximum(var, eps))
    rescaled = (x - mean) * var_rsqrt * gamma[None] + beta[None]
    return rescaled, mean, var


if __name__ == "__main__":
    key = jax.random.PRNGKey(0)
    k1, k2, k3, k4 = jax.random.split(key, 4)

    # ---- Case 1: small shapes, module-default parameters (gamma=1, beta=0) ----
    B, V, T = 2, 4, 16
    x = jax.random.normal(k1, (B, V, T), dtype=jnp.float32)
    gamma = jnp.ones((V, 1), dtype=jnp.float32)    # nn.Parameter(torch.ones(V, 1))
    beta = jnp.zeros((V, 1), dtype=jnp.float32)    # nn.Parameter(torch.zeros(V, 1))

    rescaled, reverse_fn, stats = revin_forward(x, gamma, beta, return_statistics=True)
    rescaled = jax.block_until_ready(rescaled)

    ref_rescaled, ref_mean, ref_var = revin_forward_ref(x, gamma, beta)
    assert jnp.allclose(rescaled, ref_rescaled, atol=1e-5, rtol=1e-5)
    assert jnp.allclose(stats.mean, ref_mean, atol=1e-5, rtol=1e-5)
    assert jnp.allclose(stats.variance, ref_var, atol=1e-5, rtol=1e-5)

    recon = jax.block_until_ready(reverse_fn(rescaled))
    assert jnp.allclose(recon, x, atol=1e-4, rtol=1e-4)

    # ---- Case 2: exercise the tiled (tv < V) + padded path with nontrivial params ----
    B2, V2, T2 = 2, 12, 128
    x2 = jax.random.normal(k2, (B2, V2, T2), dtype=jnp.float32)
    gamma2 = 0.5 + jax.random.uniform(k3, (V2, 1), dtype=jnp.float32)
    beta2 = jax.random.normal(k4, (V2, 1), dtype=jnp.float32)

    # Force a tiny block budget so tv=8 < V2 and V2 (=12) gets padded to 16.
    rescaled2, reverse_fn2 = revin_forward(x2, gamma2, beta2,
                                           max_block_bytes=8 * T2 * 4)
    rescaled2 = jax.block_until_ready(rescaled2)
    ref2, _, _ = revin_forward_ref(x2, gamma2, beta2)
    assert jnp.allclose(rescaled2, ref2, atol=1e-5, rtol=1e-5)

    recon2 = jax.block_until_ready(reverse_fn2(rescaled2))
    assert jnp.allclose(recon2, x2, atol=1e-4, rtol=1e-4)

    print("KERNEL_OK")
</pallas_src>

<mosaic_0001>
module attributes {stable_mosaic.version = 11 : i64} {
  func.func @_revin_fwd_kernel(%arg0: i32, %arg1: i32, %arg2: memref<1x4x16xf32, #tpu.memory_space<vmem>>, %arg3: memref<4x1xf32, #tpu.memory_space<vmem>>, %arg4: memref<4x1xf32, #tpu.memory_space<vmem>>, %arg5: memref<1x4x16xf32, #tpu.memory_space<vmem>>, %arg6: memref<1x4x2xf32, #tpu.memory_space<vmem>>) attributes {dimension_semantics = [#tpu.dimension_semantics<parallel>, #tpu.dimension_semantics<parallel>], iteration_bounds = array<i64: 2, 1>, scalar_prefetch = 0 : i64, scratch_operands = 0 : i64, tpu.core_type = #tpu.core_type<tc>, window_params = [{transform_indices = @transform_0, window_bounds = array<i64: 1, 4, 16>}, {transform_indices = @transform_1, window_bounds = array<i64: 4, 1>}, {transform_indices = @transform_2, window_bounds = array<i64: 4, 1>}, {transform_indices = @transform_3, window_bounds = array<i64: 1, 4, 16>}, {transform_indices = @transform_4, window_bounds = array<i64: 1, 4, 2>}]} {
    %c0 = arith.constant 0 : index
    %c0_0 = arith.constant 0 : index
    %c0_1 = arith.constant 0 : index
    %0 = vector.load %arg2[%c0, %c0_0, %c0_1] : memref<1x4x16xf32, #tpu.memory_space<vmem>>, vector<1x4x16xf32>
    %1 = vector.shape_cast %0 : vector<1x4x16xf32> to vector<4x16xf32>
    %cst = arith.constant dense<0.000000e+00> : vector<4xf32>
    %2 = vector.multi_reduction <add>, %1, %cst [1] : vector<4x16xf32> to vector<4xf32>
    %3 = vector.shape_cast %2 : vector<4xf32> to vector<4x1xf32>
    %cst_2 = arith.constant 6.250000e-02 : f32
    %4 = vector.broadcast %cst_2 : f32 to vector<4x1xf32>
    %5 = arith.mulf %3, %4 : vector<4x1xf32>
    %6 = vector.broadcast %5 : vector<4x1xf32> to vector<4x16xf32>
    %7 = arith.subf %1, %6 : vector<4x16xf32>
    %8 = arith.mulf %7, %7 : vector<4x16xf32>
    %cst_3 = arith.constant dense<0.000000e+00> : vector<4xf32>
    %9 = vector.multi_reduction <add>, %8, %cst_3 [1] : vector<4x16xf32> to vector<4xf32>
    %10 = vector.shape_cast %9 : vector<4xf32> to vector<4x1xf32>
    %cst_4 = arith.constant 6.250000e-02 : f32
    %11 = vector.broadcast %cst_4 : f32 to vector<4x1xf32>
    %12 = arith.mulf %10, %11 : vector<4x1xf32>
    %cst_5 = arith.constant 9.99999974E-6 : f32
    %13 = vector.broadcast %cst_5 : f32 to vector<4x1xf32>
    %14 = arith.maximumf %12, %13 : vector<4x1xf32>
    %15 = math.rsqrt %14 : vector<4x1xf32>
    %c0_6 = arith.constant 0 : index
    %c0_7 = arith.constant 0 : index
    %16 = vector.load %arg3[%c0_6, %c0_7] : memref<4x1xf32, #tpu.memory_space<vmem>>, vector<4x1xf32>
    %c0_8 = arith.constant 0 : index
    %c0_9 = arith.constant 0 : index
    %17 = vector.load %arg4[%c0_8, %c0_9] : memref<4x1xf32, #tpu.memory_space<vmem>>, vector<4x1xf32>
    %18 = arith.mulf %16, %15 : vector<4x1xf32>
    %19 = vector.broadcast %18 : vector<4x1xf32> to vector<4x16xf32>
    %20 = arith.mulf %7, %19 : vector<4x16xf32>
    %21 = vector.broadcast %17 : vector<4x1xf32> to vector<4x16xf32>
    %22 = arith.addf %20, %21 : vector<4x16xf32>
    %c0_10 = arith.constant 0 : index
    %c0_11 = arith.constant 0 : index
    %c0_12 = arith.constant 0 : index
    %23 = vector.load %arg5[%c0_10, %c0_11, %c0_12] : memref<1x4x16xf32, #tpu.memory_space<vmem>>, vector<1x4x16xf32>
    %24 = vector.shape_cast %23 : vector<1x4x16xf32> to vector<4x16xf32>
    %25 = vector.shape_cast %22 : vector<4x16xf32> to vector<1x4x16xf32>
    tpu.vector_store %arg5[%c0_10, %c0_11, %c0_12], %25 {strides = array<i32>} : memref<1x4x16xf32, #tpu.memory_space<vmem>>, vector<1x4x16xf32>,
    %c0_13 = arith.constant 0 : index
    %c0_14 = arith.constant 0 : index
    %c0_15 = arith.constant 0 : index
    %26 = vector.load %arg6[%c0_13, %c0_14, %c0_15] : memref<1x4x2xf32, #tpu.memory_space<vmem>>, vector<1x4x1xf32>
    %27 = vector.shape_cast %26 : vector<1x4x1xf32> to vector<4x1xf32>
    %28 = vector.shape_cast %5 : vector<4x1xf32> to vector<1x4x1xf32>
    tpu.vector_store %arg6[%c0_13, %c0_14, %c0_15], %28 {strides = array<i32>} : memref<1x4x2xf32, #tpu.memory_space<vmem>>, vector<1x4x1xf32>,
    %c0_16 = arith.constant 0 : index
    %c0_17 = arith.constant 0 : index
    %c1 = arith.constant 1 : index
    %29 = vector.load %arg6[%c0_16, %c0_17, %c1] : memref<1x4x2xf32, #tpu.memory_space<vmem>>, vector<1x4x1xf32>
    %30 = vector.shape_cast %29 : vector<1x4x1xf32> to vector<4x1xf32>
    %31 = vector.shape_cast %12 : vector<4x1xf32> to vector<1x4x1xf32>
    tpu.vector_store %arg6[%c0_16, %c0_17, %c1], %31 {strides = array<i32>} : memref<1x4x2xf32, #tpu.memory_space<vmem>>, vector<1x4x1xf32>,
    return
  }
  func.func @transform_0(%arg0: i32, %arg1: i32) -> (i32, i32, i32) {
    %c0_i32 = arith.constant 0 : i32
    %c0_i32_0 = arith.constant 0 : i32
    return %arg0, %arg1, %c0_i32 : i32, i32, i32
  }
  func.func @transform_1(%arg0: i32, %arg1: i32) -> (i32, i32) {
    %c0_i32 = arith.constant 0 : i32
    %c0_i32_0 = arith.constant 0 : i32
    return %arg1, %c0_i32 : i32, i32
  }
  func.func @transform_2(%arg0: i32, %arg1: i32) -> (i32, i32) {
    %c0_i32 = arith.constant 0 : i32
    %c0_i32_0 = arith.constant 0 : i32
    return %arg1, %c0_i32 : i32, i32
  }
  func.func @transform_3(%arg0: i32, %arg1: i32) -> (i32, i32, i32) {
    %c0_i32 = arith.constant 0 : i32
    %c0_i32_0 = arith.constant 0 : i32
    return %arg0, %arg1, %c0_i32 : i32, i32, i32
  }
  func.func @transform_4(%arg0: i32, %arg1: i32) -> (i32, i32, i32) {
    %c0_i32 = arith.constant 0 : i32
    %c0_i32_0 = arith.constant 0 : i32
    return %arg0, %arg1, %c0_i32 : i32, i32, i32
  }
}

</mosaic_0001>

<bundles_post_ra>
// kernel: tpu_custom_call.1
= control target key start
LH: loop header
LB: loop body
LE: loop exit
PB: predicated region body
PF: predicated region fallthrough
CT: control target
= control target key end

     0   :  { %10 = vsyncpa [#allocation3], 0  ;;  %s767_s0 = inlined_call_operand.vmem [shape: f32[2,4,16], index: 0, kind: input, shape index: {}]   ;;  %s768_s1 = inlined_call_operand.vmem [shape: f32[4,1], index: 1, kind: input, shape index: {}]   ;;  %s769_s2 = inlined_call_operand.vmem [shape: f32[4,1], index: 2, kind: input, shape index: {}]   ;;  %s770_s3 = inlined_call_operand.hbm [shape: f32[2,4,16], index: 3, kind: output, shape index: {0}]   ;;  %s771_s4 = inlined_call_operand.vmem [shape: f32[2,4,2], index: 4, kind: output, shape index: {1}]  }
   0x1   :  { %12 = vsyncpa [#allocation3 + $0x1], 0  ;;  %s643_s15 = smov 0   ;;  %s645_s16 = smov 0  }
   0x2   :  { %s647_s17 = smov 0   ;;  %s649_s18 = smov 0  }
   0x3   :  { %s651_s19 = smov 0   ;;  %s653_s20 = smov 0  }
   0x4 LB: > { %s462_s21 = sadd.s32 4294967295, %s614_s20   ;;  %s463_s22 = sadd.s32 4294967294, %s614_s20   ;;  %s614_s20 = sphi %s653_s20, %s18_s20   ;;  %s610_s19 = sphi %s651_s19, %s778_s19   ;;  %s606_s18 = sphi %s649_s18, %s777_s18   ;;  %s602_s17 = sphi %s647_s17, %s776_s17   ;;  %s598_s16 = sphi %s645_s16, %s775_s16   ;;  %s594_s15 = sphi %s643_s15, %s774_s15  }
   0x5   : > { %s30_s23 = sadd.s32 1, %s610_s19  ;;  %s119_s24 = sadd.s32 1, %s602_s17 }
   0x6   : > { %p32_p0 = scmp.ge.s32.totalorder %s30_s23, 2  ;;  %p129_p1 = scmp.ne.s32.totalorder %s602_s17, %s598_s16 }
   0x7   : > { %p130_p2 = scmp.eq.s32.totalorder %s462_s21, 1  ;;  %p135_p3 = scmp.ne.s32.totalorder %s598_s16, %s594_s15 }
   0x8   : > { %s780_s23 = smov (%p32_p0, %s30_s23), 0  ;;  %p136_p5 = scmp.eq.s32.totalorder %s463_s22, 1 }
   0x9   : > { %p683_p4 = por %p130_p2, %p129_p1  ;;  %s114_s26 = ssub.s32 %s610_s19, %s780_s23 }
   0xa   : > { %p468_p6 = scmp.ge.s32.totalorder %s614_s20, 1  ;;  %p117_p7 = scmp.eq.s32.totalorder %s114_s26, 0 }
   0xb   : > { %p690_p8 = por %p136_p5, %p135_p3  ;;  %p206_p9 = scmp.lt.s32.totalorder %s614_s20, 3 }
   0xc   : > { %s696_s28 = scalar_select %p117_p7, %s602_s17, %s119_s24  }
   0xd   : > { %p207_p10 = pnand %p468_p6, %p206_p9 }
   0xe   : > { %p249_p11 = scmp.lt.s32.totalorder (!%p207_p10), %s606_s18, 1  ;;  %vm272_vm0 = vcmask (!%p207_p10), 125952   ;;  %vm301_vm1 = vcmask (!%p207_p10), 3072   ;;  %v616_v7 = vmov (!%p207_p10), 0   ;;  %vm303_vm2 = vcmask (!%p207_p10), 11272   ;;  %s237_s21 = sand.u32 (!%p207_p10), 1, %s598_s16  }
   0xf   : > { %210 = sbr.rel (%p207_p10) target bundleno = 484 (0x1e4), region = 32  ;;  %532 = vset.pattern.permute.xlu1 (!%p207_p10), %v616_v7  ;;  %533 = vset.pattern.permute.xlu0 (!%p207_p10), %v616_v7  ;;  %v285_v11 = vld [vmem:[%s768_s1] sm:$0xf] (!%p207_p10)  ;;  %s469_s22 = sshll.u32 (!%p207_p10), %s237_s21, 2 }
  0x10   : > { %v286_v14 = vld [vmem:[%s769_s2] sm:$0xf] (!%p207_p10)  ;;  %s473_s24 = sshll.u32 (!%p207_p10), %s606_s18, 6  ;;  %s239_s26 = scalar_lea.vmem (!%p207_p10), [#allocation2], %s469_s22 }
  0x11   : > { %s719_s6 = scalar_lea.hbm (!%p207_p10), %s770_s3, %s473_s24 }
  0x16   : > { %s250_s29 = scalar_select %p249_p11, %s606_s18, 1 }
  0x17   : > { %s617_s18 = smov [#allocation2]  }
  0x18   : > { %s470_s30 = sshll.u32 %s250_s29, 2  ;;  %s327_s29 = sshll.u32 %s239_s26, 4  ;;  %s721_s29 = int_to_ptr.vmem [resolvable:$true] %s327_s29 }
  0x19   : > { %s255_s7 = scalar_lea.vmem %s767_s0, %s470_s30  ;;  %s270_s10 = scalar_lea.vmem %s771_s4, %s470_s30 }
  0x1a   : > { %v271_v0 = vld [vmem:[%s255_s7] sm:$0xf]  ;;  %s306_s7 = scalar_lea.sflag [#allocation3], %s237_s21  ;;  %s536_s8 = scalar_lea.vmem %s721_s29, 64 }
  0x1b   : > { %v273_v1 = vsel %vm272_vm0, %v271_v0, 0.0  ;;  %p537_p12 = scmp.ne.s32.totalorder %s721_s29, %s536_s8  ;;  %s540_s9 = sshll.u32 %s617_s18, 4  ;;  %s541_s9 = int_to_ptr.vmem [resolvable:$false] %s540_s9 }
  0x1c   : > { %274 = vadd.xlane.f32.xlu0 %v273_v1  ;;  %p543_p1 = scmp.lt.s32.totalorder %s721_s29, %s541_s9 }
  0x1d   : > { %p538_p13 = pnand %p537_p12, %p683_p4 }
  0x1f   : > { %p539_p0 = pneg %p538_p13 }
  0xa9   : > { %v275_v2 = vpop.xlane.xlu0 %274 }
  0xaa   : > { %v276_v3 = vmul.f32 0.0625, %v275_v2 }
  0xac   : > { %v277_v4 = vsub.f32 %v271_v0, %v276_v3  ;;  %302 = vst.msk [vmem:[%s270_s10] sm:$0xf] %vm301_vm1, %v276_v3 }
  0xae   : > { %v278_v5 = vmul.f32 %v277_v4, %v277_v4 }
  0xb0   : > { %v279_v6 = vsel %vm272_vm0, %v278_v5, 0.0 }
  0xb1   : > { %280 = vadd.xlane.f32.xlu0 %v279_v6 }
 0x13e   : > { %v281_v8 = vpop.xlane.xlu0 %280 }
 0x13f   : > { %v282_v9 = vmul.f32 0.0625, %v281_v8 }
 0x141   : > { %v283_v10 = vmax.f32 %v282_v9, 1e-05  ;;  %304 = vst.msk [vmem:[%s270_s10] sm:$0xf] %vm303_vm2, %v282_v9  ;;  %s542_s10 = scalar_lea.vmem %s541_s9, 128 }
 0x142   : > { %p544_p2 = scmp.lt.s32.totalorder %s542_s10, %s536_s8 }
 0x143   : > { %534 = vrsqrt.f32 %v283_v10 }
 0x144   : > { %p545_p3 = por %p544_p2, %p543_p1 }
 0x146   : > { %p546_p5 = pnand %p545_p3, %p539_p0 }
 0x14d   : > { %v535_v12 = vpop.eup %534 }
 0x14e   : > { %v287_v13 = vmul.f32 %v535_v12, %v285_v11 }
 0x150   : > { %290 = vperm.xlu1 %532, %v287_v13  }
 0x154   : > { %296 = vperm.xlu1 %532, %v286_v14  }
 0x1cf   : > { %v291_v15 = vpop.permute.xlu1 %290 }
 0x1d0   : > { %v293_v16 = vmul.f32 %v291_v15, %v277_v4 }
 0x1d3   : > { %v297_v17 = vpop.permute.xlu1 %296 }
 0x1d4   : > { %v299_v18 = vadd.f32 %v297_v17, %v293_v16 }
 0x1d6   : > { %300 = vst.msk [vmem:[%s239_s26] sm:$0xf] %vm272_vm0, %v299_v18 }
 0x1d7   : > { %549 = shalt.err (!%p546_p5)
}
 0x1d8   : > { %s550_s11 = scalar_lea.hbm %s719_s6, 64  ;;  %s554_s14 = scalar_lea.hbm %s770_s3, 128 }
 0x1d9   : > { %p551_p6 = scmp.ne.s32.totalorder %s719_s6, %s550_s11  ;;  %p555_p10 = scmp.lt.u32.totalorder %s719_s6, %s770_s3 }
 0x1da   : > { %p556_p11 = scmp.lt.u32.totalorder %s554_s14, %s550_s11  ;;  %p558_p13 = scmp.lt.u32.totalorder %s550_s11, %s719_s6 }
 0x1db   : > { %p552_p7 = pnand %p551_p6, %p683_p4 }
 0x1dc   : > { %p557_p12 = por %p556_p11, %p555_p10 }
 0x1dd   : > { %p553_p9 = pneg %p552_p7 }
 0x1de   : > { %p559_p0 = por %p558_p13, %p557_p12 }
 0x1e0   : > { %p560_p1 = pnand %p559_p0, %p553_p9 }
 0x1e2   : > { %563 = shalt.err (!%p560_p1)
}
 0x1e3   : > { %476 = dma.vmem_to_hbm [thread:$0]  (%p683_p4), %s721_s29, 64, %s719_s6, %s306_s7  }
 0x1e4 PF: > { %p482_p2 = scmp.ge.s32.totalorder %s614_s20, 2  ;;  %s342_s24 = sand.u32 1, %s594_s15  }
 0x1e5   : > { %s343_s26 = scalar_lea.sflag [#allocation3], %s342_s24 }
 0x1e6   : > { %p479_p3 = pnand %p482_p2, %p690_p8 }
 0x1e8   : > { %589 = dma.done.wait (!%p479_p3), %s343_s26, 64  }
 0x1e9   : > { %591 = vsyncadd (!%p479_p3), %s343_s26, 4294967232  ;;  %s18_s20 = sadd.s32 1, %s614_s20   ;;  %s774_s15 = smov %s598_s16 }
 0x1ea   : > { %p15_p5 = scmp.ge.s32.totalorder %s18_s20, 4   ;;  %s775_s16 = smov %s602_s17 }
 0x1eb   : > { %s776_s17 = smov %s696_s28  ;;  %s777_s18 = smov %s610_s19 }
 0x1ec   : > { %s778_s19 = smov %s780_s23  ;;  %17 = sbr.rel (!%p15_p5) target bundleno = 4 (0x4), region = 85 }
 0x1f3   :  { %358 = vsyncpa [#allocation3], 1 }
 0x1f4   :  { %360 = vsyncpa [#allocation3 + $0x1], 1 }

</bundles_post_ra>
